<compile_context>
chip_gen: v5e
topology: v5e:2x2
jax: 0.10.0
libtpu: 0.0.40
codegen_flags: <defaults>
</compile_context>

<pallas_src>
import math

import jax
import jax.numpy as jnp
import numpy as np
from jax import lax
from jax.experimental import pallas as pl
from jax.experimental.pallas import tpu as pltpu

SIZE = 32      # input feature size (== hidden_size, required by `fit`)
HIDDEN = 32    # hidden_size
SLOTS = 16     # learned memory slots (Memory)
WINDOW = 2     # local-attention half window (LocalAttention)

SLAB_ROWS = 152      # packed parameter slab is [152, 128] f32 (~76 KiB)
TARGET_ROWS = 1024   # rows (tb * S) aimed for per grid step


def _softmax(x):
    m = jnp.max(x, axis=-1, keepdims=True)
    e = jnp.exp(x - m)
    return e / jnp.sum(e, axis=-1, keepdims=True)


def make_kernel(tb, s):
    """Kernel processing `tb` batch elements (each of seq length `s`) per step."""
    rows = tb * s
    inv_sqrt_2 = 1.0 / math.sqrt(2.0)
    offs = list(range(-WINDOW, WINDOW + 1))   # the 2W+1 attention diagonals

    def kernel(x_ref, w_ref, o_ref):
        x = x_ref[...]                                    # [rows, SIZE]

        # ---- unpack the parameter slab (static slices; every MXU RHS band
        # starts at lane 0, and the slab's index_map is constant so it is only
        # DMA'd on the first grid step) -----------------------------------------
        w1    = w_ref[0:32, 0:32]          # transor weight
        wqkv  = w_ref[32:64, 0:96]         # fused q|k|v (k columns pre-scaled)
        whb   = w_ref[64:96, 0:48]         # [wf_h | mem.T / sqrt(H)]
        wowf  = w_ref[96:128, 0:32]        # wo @ wf_m (attention out-proj folded)
        mem   = w_ref[128:144, 0:32]       # memory bank [SLOTS, HIDDEN]
        b1    = w_ref[144:145, 0:32]
        bqkv  = w_ref[145:146, 0:96]       # fused bias (bk pre-scaled)
        bft   = w_ref[146:147, 0:32]       # bf + bo @ wf_m
        gamma = w_ref[147:148, 0:32]
        beta  = w_ref[148:149, 0:32]

        # ---- transor: Linear(size -> hidden) -----------------------------------
        h = jnp.dot(x, w1, preferred_element_type=jnp.float32) + b1      # [rows, H]

        # ---- fused h path: fit-h term and memory scores in ONE matmul ----------
        hb = jnp.dot(h, whb, preferred_element_type=jnp.float32)          # [rows, 48]
        y_h = hb[:, 0:32]                                                 # h @ wf_h
        sc  = hb[:, 32:48]                                 # h @ mem.T / sqrt(H)

        # ---- Memory: softmax read over the learned memory bank -----------------
        mind = jnp.dot(_softmax(sc), mem, preferred_element_type=jnp.float32)

        # ---- LocalAttention: fused qkv projection (one lane-dense matmul) ------
        qkv = jnp.dot(mind, wqkv, preferred_element_type=jnp.float32) + bqkv
        q = qkv[:, 0:HIDDEN]
        k = qkv[:, HIDDEN:2 * HIDDEN]          # already scaled by 1/sqrt(H)
        v = qkv[:, 2 * HIDDEN:3 * HIDDEN]

        # Band attention over the 2W+1 diagonals.  Row r attends to row r+d of
        # the same batch element; validity is a per-position check, which also
        # kills any roll wrap-around across batch elements / block edges.
        pos = lax.broadcasted_iota(jnp.int32, (rows, 1), 0) % s           # [rows,1]
        neg_big = jnp.float32(-1e30)

        scores = []
        for d in offs:
            kd = k if d == 0 else pltpu.roll(k, shift=(-d) % rows, axis=0)
            sd = jnp.sum(q * kd, axis=-1, keepdims=True)                  # [rows,1]
            valid = jnp.logical_and(pos + d >= 0, pos + d < s)
            scores.append(jnp.where(valid, sd, neg_big))

        m = scores[0]
        for sd in scores[1:]:
            m = jnp.maximum(m, sd)
        es = [jnp.exp(sd - m) for sd in scores]
        denom = es[0]
        for e in es[1:]:
            denom = denom + e
        inv_den = 1.0 / denom                       # exact (tolerance-safe)

        ctx = None
        for d, e in zip(offs, es):
            vd = v if d == 0 else pltpu.roll(v, shift=(-d) % rows, axis=0)
            term = (e * inv_den) * vd
            ctx = term if ctx is None else ctx + term                     # [rows, H]

        # ---- fit: y = h@wf_h + (ctx@wo + bo)@wf_m + bf, with wo folded into wf_m
        y = y_h + jnp.dot(ctx, wowf, preferred_element_type=jnp.float32) + bft

        # ---- lim: LayerNorm(size) -----------------------------------------------
        mu = jnp.mean(y, axis=-1, keepdims=True)
        var = jnp.mean((y - mu) ** 2, axis=-1, keepdims=True)
        yn = (y - mu) * lax.rsqrt(var + 1e-5) * gamma + beta

        # ---- activate: GELU (exact erf form, torch.nn.GELU default) -------------
        out = 0.5 * yn * (1.0 + lax.erf(yn * inv_sqrt_2))
        o_ref[...] = out.astype(o_ref.dtype)
        # TODO(synk): lane-dense [rows/4,128] output repack and 4x batch
        # lane-fold (block-diagonal weights) left as follow-up optimizations.

    return kernel


def pack_params(p):
    """Pack every weight/bias into one lane-padded [SLAB_ROWS, 128] f32 slab.

    All MXU RHS bands start at lane 0; scale factors and the attention
    out-projection are folded into the packed weights at trace time.
    """
    inv_sqrt_h = 1.0 / math.sqrt(HIDDEN)

    wqkv = jnp.concatenate([p["wq"], p["wk"] * inv_sqrt_h, p["wv"]], axis=1)  # [H,96]
    bqkv = jnp.concatenate([p["bq"], p["bk"] * inv_sqrt_h, p["bv"]], axis=1)  # [1,96]
    wf_h = p["wf"][:SIZE, :]            # multiplies h   (first half of the concat)
    wf_m = p["wf"][SIZE:, :]            # multiplies mind (second half)
    whb = jnp.concatenate([wf_h, p["mem"].T * inv_sqrt_h], axis=1)            # [32,48]
    wowf = p["wo"] @ wf_m                                                     # [32,32]
    bft = p["bf"] + p["bo"] @ wf_m                                            # [1,32]

    slab = jnp.zeros((SLAB_ROWS, 128), jnp.float32)
    slab = slab.at[0:32, 0:32].set(p["w1"])
    slab = slab.at[32:64, 0:96].set(wqkv)
    slab = slab.at[64:96, 0:48].set(whb)
    slab = slab.at[96:128, 0:32].set(wowf)
    slab = slab.at[128:144, 0:32].set(p["mem"])
    slab = slab.at[144:145, 0:32].set(p["b1"])
    slab = slab.at[145:146, 0:96].set(bqkv)
    slab = slab.at[146:147, 0:32].set(bft)
    slab = slab.at[147:148, 0:32].set(p["gamma"])
    slab = slab.at[148:149, 0:32].set(p["beta"])
    return slab


def _default_tb(B, S):
    """Pick the per-step batch tile: ~TARGET_ROWS rows per step, even #steps."""
    cap = max(1, TARGET_ROWS // max(S, 1))
    if B <= 1:
        return 1
    steps = -(-B // cap)          # minimum #steps keeping rows <= TARGET_ROWS
    if steps < 2:
        steps = 2                 # give both v7x TensorCores work
    elif steps % 2:
        steps += 1                # keep the step count even for the 2 TCs
    return -(-B // steps)


def sim_body_forward(x, params, *, tb=None):
    B, S, F = x.shape
    assert F == SIZE, "module requires size == hidden_size"
    if tb is None:
        tb = _default_tb(B, S)
    # block rows (tb*S) must be a multiple of 8 (sublane constraint)
    m = 8 // math.gcd(S, 8)
    tb = -(-tb // m) * m
    nb = -(-B // tb)              # number of grid steps
    Bp = nb * tb
    if Bp != B:                   # pad the batch so the last block is full
        x = jnp.concatenate([x, jnp.zeros((Bp - B, S, F), x.dtype)], axis=0)

    x2 = x.reshape(Bp * S, F).astype(jnp.float32)   # contiguous [B*S, F] slab
    slab = pack_params(params)
    rows = tb * S

    out = pl.pallas_call(
        make_kernel(tb, S),
        out_shape=jax.ShapeDtypeStruct((Bp * S, SIZE), jnp.float32),
        grid_spec=pltpu.PrefetchScalarGridSpec(
            num_scalar_prefetch=0,
            grid=(nb,),
            in_specs=[
                pl.BlockSpec((rows, F), lambda b: (b, 0)),
                # constant index_map -> parameter slab DMA'd once, reused
                pl.BlockSpec((SLAB_ROWS, 128), lambda b: (0, 0)),
            ],
            out_specs=pl.BlockSpec((rows, SIZE), lambda b: (b, 0)),
        ),
        compiler_params=pltpu.CompilerParams(
            dimension_semantics=("parallel",)),
    )(x2, slab)

    return out.reshape(Bp, S, SIZE)[:B]


def init_params(key):
    ks = jax.random.split(key, 16)

    def lin(k, fan_in, shape):
        bound = 1.0 / math.sqrt(fan_in)
        return jax.random.uniform(k, shape, jnp.float32, -bound, bound)

    return {
        "w1":  lin(ks[0], SIZE, (SIZE, HIDDEN)),
        "b1":  lin(ks[1], SIZE, (1, HIDDEN)),
        "mem": jax.random.normal(ks[2], (SLOTS, HIDDEN), jnp.float32) * 0.1,
        "wq":  lin(ks[3], HIDDEN, (HIDDEN, HIDDEN)),
        "bq":  lin(ks[4], HIDDEN, (1, HIDDEN)),
        "wk":  lin(ks[5], HIDDEN, (HIDDEN, HIDDEN)),
        "bk":  lin(ks[6], HIDDEN, (1, HIDDEN)),
        "wv":  lin(ks[7], HIDDEN, (HIDDEN, HIDDEN)),
        "bv":  lin(ks[8], HIDDEN, (1, HIDDEN)),
        "wo":  lin(ks[9], HIDDEN, (HIDDEN, HIDDEN)),
        "bo":  lin(ks[10], HIDDEN, (1, HIDDEN)),
        "wf":  lin(ks[11], SIZE + HIDDEN, (SIZE + HIDDEN, SIZE)),
        "bf":  lin(ks[12], SIZE + HIDDEN, (1, SIZE)),
        "gamma": jnp.ones((1, SIZE), jnp.float32),
        "beta":  jnp.zeros((1, SIZE), jnp.float32),
    }


def reference(x, p):
    """Pure-JAX reference of the same forward pass (for a sanity check)."""
    h = x @ p["w1"] + p["b1"]
    sc = h @ p["mem"].T / math.sqrt(HIDDEN)
    mind = jax.nn.softmax(sc, axis=-1) @ p["mem"]
    q = mind @ p["wq"] + p["bq"]
    k = mind @ p["wk"] + p["bk"]
    v = mind @ p["wv"] + p["bv"]
    att = jnp.einsum("bsd,btd->bst", q, k) / math.sqrt(HIDDEN)
    S = x.shape[1]
    ii = jnp.arange(S)[:, None]
    jj = jnp.arange(S)[None, :]
    att = jnp.where(jnp.abs(ii - jj) <= WINDOW, att, -1e30)
    ctx = jnp.einsum("bst,btd->bsd", jax.nn.softmax(att, axis=-1), v)
    mind = ctx @ p["wo"] + p["bo"]
    y = jnp.concatenate([h, mind], axis=-1) @ p["wf"] + p["bf"]
    mu = jnp.mean(y, axis=-1, keepdims=True)
    var = jnp.mean((y - mu) ** 2, axis=-1, keepdims=True)
    yn = (y - mu) * lax.rsqrt(var + 1e-5) * p["gamma"] + p["beta"]
    return 0.5 * yn * (1.0 + lax.erf(yn / math.sqrt(2.0)))


if __name__ == "__main__":
    key = jax.random.PRNGKey(0)
    kx, kp = jax.random.split(key)

    B, S = 2, 8
    x = jax.random.normal(kx, (B, S, SIZE), jnp.float32)
    params = init_params(kp)

    out = jax.block_until_ready(sim_body_forward(x, params))
    ref = jax.block_until_ready(reference(x, params))
    np.testing.assert_allclose(np.asarray(out), np.asarray(ref),
                               rtol=1e-4, atol=1e-4)

    # Batched path with a padded, non-divisible tail.
    B2 = 5
    x2 = jax.random.normal(jax.random.PRNGKey(1), (B2, S, SIZE), jnp.float32)
    out2 = jax.block_until_ready(sim_body_forward(x2, params))
    ref2 = jax.block_until_ready(reference(x2, params))
    np.testing.assert_allclose(np.asarray(out2), np.asarray(ref2),
                               rtol=1e-4, atol=1e-4)

    # Large-tile path: tb=128 -> 1024 rows per grid step, 2 grid steps.
    B3 = 256
    x3 = jax.random.normal(jax.random.PRNGKey(2), (B3, S, SIZE), jnp.float32)
    out3 = jax.block_until_ready(sim_body_forward(x3, params))
    ref3 = jax.block_until_ready(reference(x3, params))
    np.testing.assert_allclose(np.asarray(out3), np.asarray(ref3),
                               rtol=1e-4, atol=1e-4)

    print("KERNEL_OK")
</pallas_src>

<mosaic_0001>
module attributes {stable_mosaic.version = 11 : i64} {
  func.func @kernel(%arg0: i32, %arg1: memref<8x32xf32, #tpu.memory_space<vmem>>, %arg2: memref<152x128xf32, #tpu.memory_space<vmem>>, %arg3: memref<8x32xf32, #tpu.memory_space<vmem>>) attributes {dimension_semantics = [#tpu.dimension_semantics<parallel>], iteration_bounds = array<i64: 2>, scalar_prefetch = 0 : i64, scratch_operands = 0 : i64, tpu.core_type = #tpu.core_type<tc>, window_params = [{transform_indices = @transform_0, window_bounds = array<i64: 8, 32>}, {pipeline_mode = #tpu.pipeline_mode<synchronous>, transform_indices = @transform_1, window_bounds = array<i64: 152, 128>}, {transform_indices = @transform_2, window_bounds = array<i64: 8, 32>}]} {
    %c0 = arith.constant 0 : index
    %c0_0 = arith.constant 0 : index
    %0 = vector.load %arg1[%c0, %c0_0] : memref<8x32xf32, #tpu.memory_space<vmem>>, vector<8x32xf32>
    %c0_1 = arith.constant 0 : index
    %c0_2 = arith.constant 0 : index
    %1 = vector.load %arg2[%c0_1, %c0_2] : memref<152x128xf32, #tpu.memory_space<vmem>>, vector<32x32xf32>
    %c32 = arith.constant 32 : index
    %c0_3 = arith.constant 0 : index
    %2 = vector.load %arg2[%c32, %c0_3] : memref<152x128xf32, #tpu.memory_space<vmem>>, vector<32x96xf32>
    %c64 = arith.constant 64 : index
    %c0_4 = arith.constant 0 : index
    %3 = vector.load %arg2[%c64, %c0_4] : memref<152x128xf32, #tpu.memory_space<vmem>>, vector<32x48xf32>
    %c96 = arith.constant 96 : index
    %c0_5 = arith.constant 0 : index
    %4 = vector.load %arg2[%c96, %c0_5] : memref<152x128xf32, #tpu.memory_space<vmem>>, vector<32x32xf32>
    %c128 = arith.constant 128 : index
    %c0_6 = arith.constant 0 : index
    %5 = vector.load %arg2[%c128, %c0_6] : memref<152x128xf32, #tpu.memory_space<vmem>>, vector<16x32xf32>
    %c144 = arith.constant 144 : index
    %c0_7 = arith.constant 0 : index
    %6 = vector.load %arg2[%c144, %c0_7] : memref<152x128xf32, #tpu.memory_space<vmem>>, vector<1x32xf32>
    %c145 = arith.constant 145 : index
    %c0_8 = arith.constant 0 : index
    %7 = vector.load %arg2[%c145, %c0_8] : memref<152x128xf32, #tpu.memory_space<vmem>>, vector<1x96xf32>
    %c146 = arith.constant 146 : index
    %c0_9 = arith.constant 0 : index
    %8 = vector.load %arg2[%c146, %c0_9] : memref<152x128xf32, #tpu.memory_space<vmem>>, vector<1x32xf32>
    %c147 = arith.constant 147 : index
    %c0_10 = arith.constant 0 : index
    %9 = vector.load %arg2[%c147, %c0_10] : memref<152x128xf32, #tpu.memory_space<vmem>>, vector<1x32xf32>
    %c148 = arith.constant 148 : index
    %c0_11 = arith.constant 0 : index
    %10 = vector.load %arg2[%c148, %c0_11] : memref<152x128xf32, #tpu.memory_space<vmem>>, vector<1x32xf32>
    %cst = arith.constant dense<0.000000e+00> : vector<8x32xf32>
    %11 = tpu.matmul %0, %1, %cst {dimension_numbers = #tpu.dot_dimension_numbers<[1], [0], [0], [1], [0, 0, 1, 1], [], []>} : vector<8x32xf32>, vector<32x32xf32>, vector<8x32xf32> -> vector<8x32xf32>
    %12 = vector.broadcast %6 : vector<1x32xf32> to vector<8x32xf32>
    %13 = arith.addf %11, %12 : vector<8x32xf32>
    %cst_12 = arith.constant dense<0.000000e+00> : vector<8x48xf32>
    %14 = tpu.matmul %13, %3, %cst_12 {dimension_numbers = #tpu.dot_dimension_numbers<[1], [0], [0], [1], [0, 0, 1, 1], [], []>} : vector<8x32xf32>, vector<32x48xf32>, vector<8x48xf32> -> vector<8x48xf32>
    %15 = vector.extract_strided_slice %14 {offsets = [0, 0], sizes = [8, 32], strides = [1, 1]} : vector<8x48xf32> to vector<8x32xf32>
    %16 = vector.extract_strided_slice %14 {offsets = [0, 32], sizes = [8, 16], strides = [1, 1]} : vector<8x48xf32> to vector<8x16xf32>
    %cst_13 = arith.constant dense<0xFF800000> : vector<8xf32>
    %17 = vector.multi_reduction <maximumf>, %16, %cst_13 [1] : vector<8x16xf32> to vector<8xf32>
    %18 = vector.shape_cast %17 : vector<8xf32> to vector<8x1xf32>
    %19 = vector.broadcast %18 : vector<8x1xf32> to vector<8x16xf32>
    %20 = arith.subf %16, %19 : vector<8x16xf32>
    %21 = math.exp %20 : vector<8x16xf32>
    %cst_14 = arith.constant dense<0.000000e+00> : vector<8xf32>
    %22 = vector.multi_reduction <add>, %21, %cst_14 [1] : vector<8x16xf32> to vector<8xf32>
    %23 = vector.shape_cast %22 : vector<8xf32> to vector<8x1xf32>
    %24 = vector.broadcast %23 : vector<8x1xf32> to vector<8x16xf32>
    %25 = arith.divf %21, %24 : vector<8x16xf32>
    %cst_15 = arith.constant dense<0.000000e+00> : vector<8x32xf32>
    %26 = tpu.matmul %25, %5, %cst_15 {dimension_numbers = #tpu.dot_dimension_numbers<[1], [0], [0], [1], [0, 0, 1, 1], [], []>} : vector<8x16xf32>, vector<16x32xf32>, vector<8x32xf32> -> vector<8x32xf32>
    %cst_16 = arith.constant dense<0.000000e+00> : vector<8x96xf32>
    %27 = tpu.matmul %26, %2, %cst_16 {dimension_numbers = #tpu.dot_dimension_numbers<[1], [0], [0], [1], [0, 0, 1, 1], [], []>} : vector<8x32xf32>, vector<32x96xf32>, vector<8x96xf32> -> vector<8x96xf32>
    %28 = vector.broadcast %7 : vector<1x96xf32> to vector<8x96xf32>
    %29 = arith.addf %27, %28 : vector<8x96xf32>
    %30 = vector.extract_strided_slice %29 {offsets = [0, 0], sizes = [8, 32], strides = [1, 1]} : vector<8x96xf32> to vector<8x32xf32>
    %31 = vector.extract_strided_slice %29 {offsets = [0, 32], sizes = [8, 32], strides = [1, 1]} : vector<8x96xf32> to vector<8x32xf32>
    %32 = vector.extract_strided_slice %29 {offsets = [0, 64], sizes = [8, 32], strides = [1, 1]} : vector<8x96xf32> to vector<8x32xf32>
    %33 = tpu.iota {dimensions = array<i32: 0>} : vector<8x1xi32>
    %c8_i32 = arith.constant 8 : i32
    %c0_i32 = arith.constant 0 : i32
    %34 = arith.cmpi eq, %c8_i32, %c0_i32 : i32
    %c1_i32 = arith.constant 1 : i32
    %35 = arith.select %34, %c1_i32, %c8_i32 : i32
    %36 = vector.broadcast %35 : i32 to vector<8x1xi32>
    %37 = arith.remsi %33, %36 : vector<8x1xi32>
    %c0_i32_17 = arith.constant 0 : i32
    %38 = vector.broadcast %c0_i32_17 : i32 to vector<8x1xi32>
    %39 = arith.cmpi ne, %37, %38 : vector<8x1xi32>
    %c0_i32_18 = arith.constant 0 : i32
    %40 = vector.broadcast %c0_i32_18 : i32 to vector<8x1xi32>
    %41 = arith.cmpi slt, %37, %40 : vector<8x1xi32>
    %c0_i32_19 = arith.constant 0 : i32
    %42 = arith.cmpi slt, %35, %c0_i32_19 : i32
    %43 = vector.broadcast %42 : i1 to vector<8x1xi1>
    %44 = vector.broadcast %43 : vector<8x1xi1> to vector<8x1xi1>
    %45 = arith.xori %41, %44 : vector<8x1xi1>
    %46 = arith.andi %45, %39 : vector<8x1xi1>
    %47 = vector.broadcast %35 : i32 to vector<8x1xi32>
    %48 = arith.addi %37, %47 : vector<8x1xi32>
    %49 = arith.select %46, %48, %37 : vector<8x1xi1>, vector<8x1xi32>
    %c2_i32 = arith.constant 2 : i32
    %50 = tpu.dynamic_rotate %31 by %c2_i32 dim 0 : vector<8x32xf32>, i32 -> vector<8x32xf32>
    %51 = arith.mulf %30, %50 : vector<8x32xf32>
    %cst_20 = arith.constant dense<0.000000e+00> : vector<8xf32>
    %52 = vector.multi_reduction <add>, %51, %cst_20 [1] : vector<8x32xf32> to vector<8xf32>
    %53 = vector.shape_cast %52 : vector<8xf32> to vector<8x1xf32>
    %c-2_i32 = arith.constant -2 : i32
    %54 = vector.broadcast %c-2_i32 : i32 to vector<8x1xi32>
    %55 = arith.addi %49, %54 : vector<8x1xi32>
    %c0_i32_21 = arith.constant 0 : i32
    %56 = vector.broadcast %c0_i32_21 : i32 to vector<8x1xi32>
    %57 = arith.cmpi sge, %55, %56 : vector<8x1xi32>
    %c-2_i32_22 = arith.constant -2 : i32
    %58 = vector.broadcast %c-2_i32_22 : i32 to vector<8x1xi32>
    %59 = arith.addi %49, %58 : vector<8x1xi32>
    %c8_i32_23 = arith.constant 8 : i32
    %60 = vector.broadcast %c8_i32_23 : i32 to vector<8x1xi32>
    %61 = arith.cmpi slt, %59, %60 : vector<8x1xi32>
    %62 = arith.andi %57, %61 : vector<8x1xi1>
    %cst_24 = arith.constant -1.000000e+30 : f32
    %63 = vector.broadcast %cst_24 : f32 to vector<8x1xf32>
    %64 = arith.select %62, %53, %63 : vector<8x1xi1>, vector<8x1xf32>
    %c1_i32_25 = arith.constant 1 : i32
    %65 = tpu.dynamic_rotate %31 by %c1_i32_25 dim 0 : vector<8x32xf32>, i32 -> vector<8x32xf32>
    %66 = arith.mulf %30, %65 : vector<8x32xf32>
    %cst_26 = arith.constant dense<0.000000e+00> : vector<8xf32>
    %67 = vector.multi_reduction <add>, %66, %cst_26 [1] : vector<8x32xf32> to vector<8xf32>
    %68 = vector.shape_cast %67 : vector<8xf32> to vector<8x1xf32>
    %c-1_i32 = arith.constant -1 : i32
    %69 = vector.broadcast %c-1_i32 : i32 to vector<8x1xi32>
    %70 = arith.addi %49, %69 : vector<8x1xi32>
    %c0_i32_27 = arith.constant 0 : i32
    %71 = vector.broadcast %c0_i32_27 : i32 to vector<8x1xi32>
    %72 = arith.cmpi sge, %70, %71 : vector<8x1xi32>
    %c-1_i32_28 = arith.constant -1 : i32
    %73 = vector.broadcast %c-1_i32_28 : i32 to vector<8x1xi32>
    %74 = arith.addi %49, %73 : vector<8x1xi32>
    %c8_i32_29 = arith.constant 8 : i32
    %75 = vector.broadcast %c8_i32_29 : i32 to vector<8x1xi32>
    %76 = arith.cmpi slt, %74, %75 : vector<8x1xi32>
    %77 = arith.andi %72, %76 : vector<8x1xi1>
    %cst_30 = arith.constant -1.000000e+30 : f32
    %78 = vector.broadcast %cst_30 : f32 to vector<8x1xf32>
    %79 = arith.select %77, %68, %78 : vector<8x1xi1>, vector<8x1xf32>
    %80 = arith.mulf %30, %31 : vector<8x32xf32>
    %cst_31 = arith.constant dense<0.000000e+00> : vector<8xf32>
    %81 = vector.multi_reduction <add>, %80, %cst_31 [1] : vector<8x32xf32> to vector<8xf32>
    %82 = vector.shape_cast %81 : vector<8xf32> to vector<8x1xf32>
    %c0_i32_32 = arith.constant 0 : i32
    %83 = vector.broadcast %c0_i32_32 : i32 to vector<8x1xi32>
    %84 = arith.addi %49, %83 : vector<8x1xi32>
    %c0_i32_33 = arith.constant 0 : i32
    %85 = vector.broadcast %c0_i32_33 : i32 to vector<8x1xi32>
    %86 = arith.cmpi sge, %84, %85 : vector<8x1xi32>
    %c0_i32_34 = arith.constant 0 : i32
    %87 = vector.broadcast %c0_i32_34 : i32 to vector<8x1xi32>
    %88 = arith.addi %49, %87 : vector<8x1xi32>
    %c8_i32_35 = arith.constant 8 : i32
    %89 = vector.broadcast %c8_i32_35 : i32 to vector<8x1xi32>
    %90 = arith.cmpi slt, %88, %89 : vector<8x1xi32>
    %91 = arith.andi %86, %90 : vector<8x1xi1>
    %cst_36 = arith.constant -1.000000e+30 : f32
    %92 = vector.broadcast %cst_36 : f32 to vector<8x1xf32>
    %93 = arith.select %91, %82, %92 : vector<8x1xi1>, vector<8x1xf32>
    %c7_i32 = arith.constant 7 : i32
    %94 = tpu.dynamic_rotate %31 by %c7_i32 dim 0 : vector<8x32xf32>, i32 -> vector<8x32xf32>
    %95 = arith.mulf %30, %94 : vector<8x32xf32>
    %cst_37 = arith.constant dense<0.000000e+00> : vector<8xf32>
    %96 = vector.multi_reduction <add>, %95, %cst_37 [1] : vector<8x32xf32> to vector<8xf32>
    %97 = vector.shape_cast %96 : vector<8xf32> to vector<8x1xf32>
    %c1_i32_38 = arith.constant 1 : i32
    %98 = vector.broadcast %c1_i32_38 : i32 to vector<8x1xi32>
    %99 = arith.addi %49, %98 : vector<8x1xi32>
    %c0_i32_39 = arith.constant 0 : i32
    %100 = vector.broadcast %c0_i32_39 : i32 to vector<8x1xi32>
    %101 = arith.cmpi sge, %99, %100 : vector<8x1xi32>
    %c1_i32_40 = arith.constant 1 : i32
    %102 = vector.broadcast %c1_i32_40 : i32 to vector<8x1xi32>
    %103 = arith.addi %49, %102 : vector<8x1xi32>
    %c8_i32_41 = arith.constant 8 : i32
    %104 = vector.broadcast %c8_i32_41 : i32 to vector<8x1xi32>
    %105 = arith.cmpi slt, %103, %104 : vector<8x1xi32>
    %106 = arith.andi %101, %105 : vector<8x1xi1>
    %cst_42 = arith.constant -1.000000e+30 : f32
    %107 = vector.broadcast %cst_42 : f32 to vector<8x1xf32>
    %108 = arith.select %106, %97, %107 : vector<8x1xi1>, vector<8x1xf32>
    %c6_i32 = arith.constant 6 : i32
    %109 = tpu.dynamic_rotate %31 by %c6_i32 dim 0 : vector<8x32xf32>, i32 -> vector<8x32xf32>
    %110 = arith.mulf %30, %109 : vector<8x32xf32>
    %cst_43 = arith.constant dense<0.000000e+00> : vector<8xf32>
    %111 = vector.multi_reduction <add>, %110, %cst_43 [1] : vector<8x32xf32> to vector<8xf32>
    %112 = vector.shape_cast %111 : vector<8xf32> to vector<8x1xf32>
    %c2_i32_44 = arith.constant 2 : i32
    %113 = vector.broadcast %c2_i32_44 : i32 to vector<8x1xi32>
    %114 = arith.addi %49, %113 : vector<8x1xi32>
    %c0_i32_45 = arith.constant 0 : i32
    %115 = vector.broadcast %c0_i32_45 : i32 to vector<8x1xi32>
    %116 = arith.cmpi sge, %114, %115 : vector<8x1xi32>
    %c2_i32_46 = arith.constant 2 : i32
    %117 = vector.broadcast %c2_i32_46 : i32 to vector<8x1xi32>
    %118 = arith.addi %49, %117 : vector<8x1xi32>
    %c8_i32_47 = arith.constant 8 : i32
    %119 = vector.broadcast %c8_i32_47 : i32 to vector<8x1xi32>
    %120 = arith.cmpi slt, %118, %119 : vector<8x1xi32>
    %121 = arith.andi %116, %120 : vector<8x1xi1>
    %cst_48 = arith.constant -1.000000e+30 : f32
    %122 = vector.broadcast %cst_48 : f32 to vector<8x1xf32>
    %123 = arith.select %121, %112, %122 : vector<8x1xi1>, vector<8x1xf32>
    %124 = arith.maximumf %64, %79 : vector<8x1xf32>
    %125 = arith.maximumf %124, %93 : vector<8x1xf32>
    %126 = arith.maximumf %125, %108 : vector<8x1xf32>
    %127 = arith.maximumf %126, %123 : vector<8x1xf32>
    %128 = arith.subf %64, %127 : vector<8x1xf32>
    %129 = math.exp %128 : vector<8x1xf32>
    %130 = arith.subf %79, %127 : vector<8x1xf32>
    %131 = math.exp %130 : vector<8x1xf32>
    %132 = arith.subf %93, %127 : vector<8x1xf32>
    %133 = math.exp %132 : vector<8x1xf32>
    %134 = arith.subf %108, %127 : vector<8x1xf32>
    %135 = math.exp %134 : vector<8x1xf32>
    %136 = arith.subf %123, %127 : vector<8x1xf32>
    %137 = math.exp %136 : vector<8x1xf32>
    %138 = arith.addf %129, %131 : vector<8x1xf32>
    %139 = arith.addf %138, %133 : vector<8x1xf32>
    %140 = arith.addf %139, %135 : vector<8x1xf32>
    %141 = arith.addf %140, %137 : vector<8x1xf32>
    %cst_49 = arith.constant 1.000000e+00 : f32
    %142 = vector.broadcast %cst_49 : f32 to vector<8x1xf32>
    %143 = arith.divf %142, %141 : vector<8x1xf32>
    %c2_i32_50 = arith.constant 2 : i32
    %144 = tpu.dynamic_rotate %32 by %c2_i32_50 dim 0 : vector<8x32xf32>, i32 -> vector<8x32xf32>
    %145 = arith.mulf %129, %143 : vector<8x1xf32>
    %146 = vector.broadcast %145 : vector<8x1xf32> to vector<8x32xf32>
    %147 = arith.mulf %146, %144 : vector<8x32xf32>
    %c1_i32_51 = arith.constant 1 : i32
    %148 = tpu.dynamic_rotate %32 by %c1_i32_51 dim 0 : vector<8x32xf32>, i32 -> vector<8x32xf32>
    %149 = arith.mulf %131, %143 : vector<8x1xf32>
    %150 = vector.broadcast %149 : vector<8x1xf32> to vector<8x32xf32>
    %151 = arith.mulf %150, %148 : vector<8x32xf32>
    %152 = arith.addf %147, %151 : vector<8x32xf32>
    %153 = arith.mulf %133, %143 : vector<8x1xf32>
    %154 = vector.broadcast %153 : vector<8x1xf32> to vector<8x32xf32>
    %155 = arith.mulf %154, %32 : vector<8x32xf32>
    %156 = arith.addf %152, %155 : vector<8x32xf32>
    %c7_i32_52 = arith.constant 7 : i32
    %157 = tpu.dynamic_rotate %32 by %c7_i32_52 dim 0 : vector<8x32xf32>, i32 -> vector<8x32xf32>
    %158 = arith.mulf %135, %143 : vector<8x1xf32>
    %159 = vector.broadcast %158 : vector<8x1xf32> to vector<8x32xf32>
    %160 = arith.mulf %159, %157 : vector<8x32xf32>
    %161 = arith.addf %156, %160 : vector<8x32xf32>
    %c6_i32_53 = arith.constant 6 : i32
    %162 = tpu.dynamic_rotate %32 by %c6_i32_53 dim 0 : vector<8x32xf32>, i32 -> vector<8x32xf32>
    %163 = arith.mulf %137, %143 : vector<8x1xf32>
    %164 = vector.broadcast %163 : vector<8x1xf32> to vector<8x32xf32>
    %165 = arith.mulf %164, %162 : vector<8x32xf32>
    %166 = arith.addf %161, %165 : vector<8x32xf32>
    %cst_54 = arith.constant dense<0.000000e+00> : vector<8x32xf32>
    %167 = tpu.matmul %166, %4, %cst_54 {dimension_numbers = #tpu.dot_dimension_numbers<[1], [0], [0], [1], [0, 0, 1, 1], [], []>} : vector<8x32xf32>, vector<32x32xf32>, vector<8x32xf32> -> vector<8x32xf32>
    %168 = arith.addf %15, %167 : vector<8x32xf32>
    %169 = vector.broadcast %8 : vector<1x32xf32> to vector<8x32xf32>
    %170 = arith.addf %168, %169 : vector<8x32xf32>
    %cst_55 = arith.constant dense<0.000000e+00> : vector<8xf32>
    %171 = vector.multi_reduction <add>, %170, %cst_55 [1] : vector<8x32xf32> to vector<8xf32>
    %172 = vector.shape_cast %171 : vector<8xf32> to vector<8x1xf32>
    %cst_56 = arith.constant 3.200000e+01 : f32
    %173 = vector.broadcast %cst_56 : f32 to vector<8x1xf32>
    %174 = arith.divf %172, %173 : vector<8x1xf32>
    %175 = vector.broadcast %174 : vector<8x1xf32> to vector<8x32xf32>
    %176 = arith.subf %170, %175 : vector<8x32xf32>
    %177 = arith.mulf %176, %176 : vector<8x32xf32>
    %cst_57 = arith.constant dense<0.000000e+00> : vector<8xf32>
    %178 = vector.multi_reduction <add>, %177, %cst_57 [1] : vector<8x32xf32> to vector<8xf32>
    %179 = vector.shape_cast %178 : vector<8xf32> to vector<8x1xf32>
    %cst_58 = arith.constant 3.200000e+01 : f32
    %180 = vector.broadcast %cst_58 : f32 to vector<8x1xf32>
    %181 = arith.divf %179, %180 : vector<8x1xf32>
    %182 = vector.broadcast %174 : vector<8x1xf32> to vector<8x32xf32>
    %183 = arith.subf %170, %182 : vector<8x32xf32>
    %cst_59 = arith.constant 9.99999974E-6 : f32
    %184 = vector.broadcast %cst_59 : f32 to vector<8x1xf32>
    %185 = arith.addf %181, %184 : vector<8x1xf32>
    %186 = math.rsqrt %185 : vector<8x1xf32>
    %187 = vector.broadcast %186 : vector<8x1xf32> to vector<8x32xf32>
    %188 = arith.mulf %183, %187 : vector<8x32xf32>
    %189 = vector.broadcast %9 : vector<1x32xf32> to vector<8x32xf32>
    %190 = arith.mulf %188, %189 : vector<8x32xf32>
    %191 = vector.broadcast %10 : vector<1x32xf32> to vector<8x32xf32>
    %192 = arith.addf %190, %191 : vector<8x32xf32>
    %cst_60 = arith.constant 5.000000e-01 : f32
    %193 = vector.broadcast %cst_60 : f32 to vector<8x32xf32>
    %194 = arith.mulf %193, %192 : vector<8x32xf32>
    %cst_61 = arith.constant 0.707106769 : f32
    %195 = vector.broadcast %cst_61 : f32 to vector<8x32xf32>
    %196 = arith.mulf %192, %195 : vector<8x32xf32>
    %197 = math.erf %196 : vector<8x32xf32>
    %cst_62 = arith.constant 1.000000e+00 : f32
    %198 = vector.broadcast %cst_62 : f32 to vector<8x32xf32>
    %199 = arith.addf %198, %197 : vector<8x32xf32>
    %200 = arith.mulf %194, %199 : vector<8x32xf32>
    %c0_63 = arith.constant 0 : index
    %c0_64 = arith.constant 0 : index
    %201 = vector.load %arg3[%c0_63, %c0_64] : memref<8x32xf32, #tpu.memory_space<vmem>>, vector<8x32xf32>
    tpu.vector_store %arg3[%c0_63, %c0_64], %200 {strides = array<i32>} : memref<8x32xf32, #tpu.memory_space<vmem>>, vector<8x32xf32>,
    return
  }
  func.func @transform_0(%arg0: i32) -> (i32, i32) {
    %c0_i32 = arith.constant 0 : i32
    %c0_i32_0 = arith.constant 0 : i32
    return %arg0, %c0_i32 : i32, i32
  }
  func.func @transform_1(%arg0: i32) -> (i32, i32) {
    %c0_i32 = arith.constant 0 : i32
    %c0_i32_0 = arith.constant 0 : i32
    %c0_i32_1 = arith.constant 0 : i32
    return %c0_i32, %c0_i32_0 : i32, i32
  }
  func.func @transform_2(%arg0: i32) -> (i32, i32) {
    %c0_i32 = arith.constant 0 : i32
    %c0_i32_0 = arith.constant 0 : i32
    return %arg0, %c0_i32 : i32, i32
  }
}

</mosaic_0001>

<bundles_post_ra>
// kernel: tpu_custom_call.1
= control target key start
LH: loop header
LB: loop body
LE: loop exit
PB: predicated region body
PF: predicated region fallthrough
CT: control target
= control target key end

     0   :  { %7 = vsyncpa [#allocation3], 0  ;;  %s1094_s0 = inlined_call_operand.hbm [shape: f32[16,32], index: 0, kind: input, shape index: {}]   ;;  %s1095_s1 = inlined_call_operand.hbm [shape: f32[152,128], index: 1, kind: input, shape index: {}]   ;;  %s1096_s2 = inlined_call_operand.hbm [shape: f32[16,32], index: 2, kind: output, shape index: {}]  }
   0x1   :  { %9 = vsyncpa [#allocation3 + $0x1], 0 }
   0x2   :  { %10 = vsyncpa [#allocation6], 0 }
   0x3   :  { %11 = vsyncpa [#allocation4], 0 }
   0x4   :  { %13 = vsyncpa [#allocation4 + $0x1], 0  ;;  %s920_s9 = smov 0   ;;  %s922_s10 = smov 0  }
   0x5   :  { %s924_s11 = smov 0   ;;  %s926_s12 = smov 0  }
   0x6 LB: > { %s108_s15 = sshll.u32 %s1095_s1, 4  ;;  %s944_s16 = sadd.s32 4294967295, %s897_s12   ;;  %s897_s12 = sphi %s926_s12, %s1106_s12   ;;  %s893_s11 = sphi %s924_s11, %s1105_s11   ;;  %s889_s10 = sphi %s922_s10, %s1104_s10   ;;  %s885_s9 = sphi %s920_s9, %s1103_s9   ;;  %s109_s15 = int_to_ptr.hbm [resolvable:$true] %s108_s15 }
   0x7   : > { %p659_p0 = scmp.ge.s32.totalorder %s897_s12, 1  ;;  %p40_p1 = scmp.eq.s32.totalorder %s944_s16, 0 }
   0x8   : > { %p97_p2 = scmp.lt.s32.totalorder %s897_s12, 3  ;;  %s899_s18 = smov [#allocation5]  }
   0x9   : > { %s110_s19 = sshll.u32 %s899_s18, 4  ;;  %s900_s20 = smov 128   ;;  %s111_s19 = int_to_ptr.vmem [resolvable:$true] %s110_s19 }
   0xa   : > { %p949_p3 = pnand %p659_p0, %p97_p2  ;;  %s901_s21 = smov 8  }
   0xb   : > { %s658_s22 = sadd.s32 4294967294, %s897_s12   ;;  %s960_s23 = sadd.s32 1, %s897_s12  }
   0xc   : > { %p686_p4 = pneg %p949_p3  ;;  %s26_s24 = sadd.s32 1, %s893_s11 }
   0xd   : > { %s23_s25 = ssub.s32 %s897_s12, %s960_s23  ;;  %p33_p7 = scmp.ne.s32.totalorder %s893_s11, %s889_s10 }
   0xe   : > { %p687_p6 = pnand %p686_p4, %p40_p1  ;;  %p24_p8 = scmp.eq.s32.totalorder %s23_s25, 0 }
   0xf   : > { %p34_p9 = scmp.eq.s32.totalorder %s897_s12, 0  ;;  %p39_p10 = scmp.ne.s32.totalorder %s889_s10, %s885_s9 }
  0x10   : > { %689 = dma.hbm_to_vmem [thread:$0]  (!%p687_p6), %s109_s15, 2432, %s111_s19, [#allocation6], %s900_s20, %s900_s20, %s901_s21  }
  0x11   : > { %p84_p11 = scmp.eq.s32.totalorder %s944_s16, 1  ;;  %p976_p12 = por %p40_p1, %p39_p10 }
  0x12   : > { %s972_s26 = scalar_select %p24_p8, %s893_s11, %s26_s24  }
  0x13   : > { %p980_p13 = por %p84_p11, %p33_p7  ;;  %p90_p0 = scmp.eq.s32.totalorder %s658_s22, 1 }
  0x14   : > { %p35_p2 = por %p34_p9, %p33_p7  ;;  %s124_s29 = sand.u32 1, %s893_s11  }
  0x15   : > { %p985_p4 = por %p90_p0, %p39_p10  ;;  %p699_p6 = scmp.lt.s32.totalorder %s897_s12, 2 }
  0x16   : > { %s662_s3 = sshll.u32 %s124_s29, 3  ;;  %s663_s4 = sshll.u32 %s897_s12, 3 }
  0x17   : > { %s132_s7 = scalar_lea.hbm %s1094_s0, %s663_s4  ;;  %s128_s13 = scalar_lea.vmem [#allocation2], %s662_s3 }
  0x18   : > { %s134_s8 = sshll.u32 %s132_s7, 4  ;;  %s136_s14 = sshll.u32 %s128_s13, 4  ;;  %s135_s8 = int_to_ptr.hbm [resolvable:$true] %s134_s8  ;;  %s137_s14 = int_to_ptr.vmem [resolvable:$true] %s136_s14 }
  0x19   : > { %p994_p8 = pnand %p699_p6, %p35_p2  ;;  %s125_s18 = scalar_lea.sflag [#allocation3], %s124_s29 }
  0x1a   : > { %s797_s19 = sshra.s32 %s135_s8, 4  ;;  %s804_s24 = scalar_lea.hbm %s1094_s0, 16  ;;  %s798_s19 = int_to_ptr.hbm [resolvable:$true] %s797_s19 }
  0x1b   : > { %s799_s20 = scalar_lea.hbm %s798_s19, 8  ;;  %p801_p9 = pneg %p994_p8 }
  0x1c   : > { %p800_p7 = scmp.ne.s32.totalorder %s798_s19, %s799_s20  ;;  %p805_p0 = scmp.lt.s32.totalorder %s798_s19, %s1094_s0 }
  0x1d   : > { %p806_p2 = scmp.lt.s32.totalorder %s804_s24, %s799_s20 }
  0x1e   : > { %p802_p10 = pnand %p801_p9, %p800_p7 }
  0x1f   : > { %p807_p6 = por %p806_p2, %p805_p0 }
  0x20   : > { %p803_p11 = pneg %p802_p10 }
  0x22   : > { %p808_p5 = pnand %p807_p6, %p803_p11 }
  0x24   : > { %811 = shalt.err (!%p808_p5)
}
  0x25   : > { %693 = dma.hbm_to_vmem [thread:$0]  (!%p994_p8), %s135_s8, 128, %s137_s14, %s125_s18  }
  0x26   : > { %145 = sbr.rel (%p949_p3) target bundleno = 1919 (0x77f), region = 28  ;;  %s1011_s29 = sand.u32 (!%p949_p3), 1, %s889_s10  }
  0x27   : > { %s665_s4 = sshll.u32 (!%p949_p3), %s1011_s29, 3  ;;  %s148_s5 = scalar_lea.sflag (!%p949_p3), [#allocation3], %s1011_s29 }
  0x28   : > { %s151_s6 = scalar_lea.vmem (!%p949_p3), [#allocation2], %s665_s4 }
  0x2b   : > { %872 = dma.done.wait (%p976_p12), %s148_s5, 128  }
  0x2c   : > { %874 = vsyncadd (%p976_p12), %s148_s5, 4294967168 }
  0x2d   : > { %876 = dma.done.wait (%p40_p1), [#allocation6], 2432  }
  0x2e   : > { %878 = vsyncadd (%p40_p1), [#allocation6], 4294964864  ;;  %v182_v0 = vld [vmem:[#allocation5 + $0x18] sm:$0xff]  ;;  %v181_v1 = vld [vmem:[#allocation5 + $0x10] sm:$0xff]  ;;  %vm203_vm0 = vcmask 261120   ;;  %vm250_vm1 = vcmask 392448   ;;  %v329_v58 = vlaneseq }
  0x2f   : > { %219 = vmatpush.msra.mxu0 %v182_v0  ;;  %v190_v2 = vld [vmem:[#allocation5 + $0x58] sm:$0xff]  ;;  %v180_v3 = vld [vmem:[#allocation5 + $0x8] sm:$0xff]  ;;  %v189_v4 = vld [vmem:[#allocation5 + $0x50] sm:$0xff]  ;;  %s902_s17 = smov 96   ;;  %vm261_vm2 = vcmask 130048   ;;  %s903_s27 = smov 64  }
  0x30   : > { %242 = vmatpush.msra.mxu1 %v190_v2  ;;  %v179_v5 = vld [vmem:[#allocation5] sm:$0xff]  ;;  %v178_v6 = vld [vmem:[%s151_s6] sm:$0xff]  ;;  %v188_v7 = vld [vmem:[#allocation5 + $0x48] sm:$0xff]  ;;  %v330_v59 = vshrl.u32 %v329_v58, 7  ;;  %s675_s7 = sshll.u32 %s944_s16, 3  ;;  %s177_s15 = scalar_lea.vmem [#allocation7], %s665_s4 }
  0x31   : > { %220 = vmatpush.msra.mxu0 %v181_v1  ;;  %v187_v8 = vld [vmem:[#allocation5 + $0x40] sm:$0xff]  ;;  %v740_v9 = vld [vmem:[#allocation5 + $0x90] ss:$0 sm:$0xff]  ;;  %v196_v20 = vld [vmem:[#allocation5 + $0x88] sm:$0xff]  ;;  %s573_s14 = scalar_lea.hbm %s1096_s2, %s675_s7  ;;  %s575_s18 = sshll.u32 %s177_s15, 4  ;;  %s576_s18 = int_to_ptr.vmem [resolvable:$true] %s575_s18 }
  0x32   : > { %243 = vmatpush.msra.mxu1 %v189_v4  ;;  %v195_v21 = vld [vmem:[#allocation5 + $0x80] sm:$0xff]  ;;  %299 = vmatpush.msra.mxu2 %v196_v20  ;;  %v186_v34 = vld [vmem:[#allocation5 + $0x38] sm:$0xff]  ;;  %v185_v35 = vld [vmem:[#allocation5 + $0x30] sm:$0xff]  ;;  %v335_v60 = vand.u32 7, %v330_v59  ;;  %s577_s19 = sshll.u32 %s573_s14, 4  ;;  %s563_s16 = scalar_lea.sflag [#allocation4], %s1011_s29  ;;  %s578_s19 = int_to_ptr.hbm [resolvable:$true] %s577_s19 }
  0x33   : > { %221 = vmatpush.msra.mxu0 %v180_v3  ;;  %321 = vmatpush.msra.mxu3 %v186_v34  ;;  %v184_v36 = vld [vmem:[#allocation5 + $0x28] sm:$0xff]  ;;  %v183_v38 = vld [vmem:[#allocation5 + $0x20] sm:$0xff]  ;;  %v741_v40 = vld [vmem:[#allocation5 + $0x91] ss:$0 sm:$0xff]  ;;  %s841_s20 = sshra.s32 %s578_s19, 4  ;;  %s847_s25 = scalar_lea.hbm %s1096_s2, 16  ;;  %s842_s20 = int_to_ptr.hbm [resolvable:$true] %s841_s20 }
  0x34   : > { %244 = vmatpush.msra.mxu1 %v188_v7  ;;  %300 = vmatpush.msra.mxu2 %v195_v21  ;;  %v362_v61 = vadd.s32 4294967295, %v335_v60  ;;  %v352_v62 = vadd.s32 4294967294, %v335_v60  ;;  %v380_v1 = vadd.s32 1, %v335_v60  ;;  %v193_v58 = vld [vmem:[#allocation5 + $0x70] sm:$0xff]  ;;  %v192_v59 = vld [vmem:[#allocation5 + $0x68] sm:$0xff]  ;;  %s843_s21 = scalar_lea.hbm %s842_s20, 8  ;;  %p848_p12 = scmp.lt.s32.totalorder %s842_s20, %s1096_s2 }
  0x35   : > { %222 = vmatpush.msra.mxu0 %v179_v5  ;;  %322 = vmatpush.msra.mxu3 %v185_v35  ;;  %p844_p1 = scmp.ne.s32.totalorder %s842_s20, %s843_s21  ;;  %p849_p8 = scmp.lt.s32.totalorder %s847_s25, %s843_s21 }
  0x36   : > { %668 = vmatmul.msk.f32.vlgmr.msra.gmra.mxu0 %vm203_vm0, %v178_v6  ;;  %245 = vmatpush.msra.mxu1 %v187_v8  ;;  %vm363_vm7 = vcmp.ge.s32.totalorder %v362_v61, 0  ;;  %vm353_vm8 = vcmp.ge.s32.totalorder %v352_v62, 0  ;;  %vm382_vm9 = vcmp.lt.s32.totalorder %v380_v1, 8  ;;  %v390_v6 = vadd.s32 2, %v335_v60  ;;  %v191_v60 = vld [vmem:[#allocation5 + $0x60] sm:$0xff] }
  0x37   : > { %323 = vmatpush.msra.mxu3 %v184_v36  ;;  %p845_p3 = pnand %p844_p1, %p980_p13  ;;  %p850_p7 = por %p849_p8, %p848_p12 }
  0x38   : > { %vm392_vm10 = vcmp.lt.s32.totalorder %v390_v6, 8 }
  0x39   : > { %324 = vmatpush.msra.mxu3 %v183_v38  ;;  %p846_p5 = pneg %p845_p3 }
  0x3b   : > { %p851_p9 = pnand %p850_p7, %p846_p5 }
  0xb3   : > { %v224_v10 = vpop.f32.mrf.mxu0 }
  0xb4   : > { %v225_v11 = vadd.f32 %v740_v9, %v224_v10 }
  0xb6   : > { %669 = vmatmul.msk.f32.vlgmr.msra.gmra.mxu1 %vm203_vm0, %v225_v11 }
 0x133   : > { %v1027_v12 = vpop.f32.mrf.mxu1 }
 0x134   : > { %v251_v13 = vsel %vm250_vm1, %v1027_v12, -inf }
 0x135   : > { %252 = vmax.xlane.f32.xlu0 %v251_v13 }
 0x1a8   : > { %v253_v14 = vpop.xlane.xlu0 %252 }
 0x1a9   : > { %v254_v15 = vsub.f32 %v1027_v12, %v253_v14 }
 0x1ab   : > { %v255_v16 = vmul.f32 1.442695, %v254_v15 }
 0x1ad   : > { %745 = vpow2.f32 %v255_v16 }
 0x1b3   : > { %v746_v17 = vpop.eup %745 }
 0x1b4   : > { %258 = vrot.lane.b32.xlu0 %v746_v17, %s902_s17 }
 0x226   : > { %v259_v18 = vpop.permute.xlu0 %258 }
 0x227   : > { %v262_v19 = vsel %vm261_vm2, %v259_v18, 0.0 }
 0x228   : > { %263 = vadd.xlane.f32.xlu1 %v262_v19 }
 0x29b   : > { %v264_v22 = vpop.xlane.xlu1 %263 }
 0x29c   : > { %747 = vrcp.f32 %v264_v22  ;;  %v276_v26 = vand.u32 2147483648, %v264_v22  ;;  %v274_v28 = vand.u32 2147483647, %v264_v22  ;;  %vm270_vm4 = vweird.f32 %v264_v22 }
 0x29e   : > { %v277_v30 = vor.u32 1.1754944e-38, %v276_v26  ;;  %vm275_vm6 = vcmp.eq.f32.partialorder %v274_v28, 8.507059e+37 }
 0x2a2   : > { %v748_v23 = vpop.eup %747 }
 0x2a3   : > { %v266_v24 = vmul.f32 %v748_v23, %v264_v22  ;;  %vm271_vm3 = vweird.f32 %v748_v23 }
 0x2a4   : > { %vm272_vm5 = vmor %vm270_vm4, %vm271_vm3 }
 0x2a5   : > { %v267_v25 = vsub.f32 1.0, %v266_v24 }
 0x2a7   : > { %v268_v27 = vmul.f32 %v748_v23, %v267_v25  ;;  %v194_v25 = vld [vmem:[#allocation5 + $0x78] sm:$0xff] }
 0x2a8   : > { %473 = vmatpush.msrb.mxu2 %v194_v25 }
 0x2a9   : > { %v269_v29 = vadd.f32 %v748_v23, %v268_v27 }
 0x2aa   : > { %474 = vmatpush.msrb.mxu2 %v193_v58 }
 0x2ab   : > { %v273_v31 = vsel %vm272_vm5, %v748_v23, %v269_v29 }
 0x2ac   : > { %v278_v32 = vsel %vm275_vm6, %v277_v30, %v273_v31  ;;  %475 = vmatpush.msrb.mxu2 %v192_v59 }
 0x2ad   : > { %v279_v33 = vmul.f32 %v746_v17, %v278_v32 }
 0x2ae   : > { %476 = vmatpush.msrb.mxu2 %v191_v60 }
 0x2af   : > { %281 = vrot.lane.b32.xlu1 %v279_v33, %s902_s17 }
 0x321   : > { %v282_v37 = vpop.permute.xlu1 %281 }
 0x322   : > { %670 = vmatmul.msk.f32.vlgmr.msra.gmra.mxu2 %vm261_vm2, %v282_v37 }
 0x3a5   : > { %v302_v39 = vpop.f32.mrf.mxu2 }
 0x3a6   : > { %671 = vmatmul.msk.f32.vlgmr.msra.gmra.mxu3 %vm203_vm0, %v302_v39 }
 0x429   : > { %v326_v41 = vpop.f32.mrf.mxu3 }
 0x42a   : > { %v1036_v42 = vadd.f32 %v741_v40, %v326_v41 }
 0x42c   : > { %344 = vrot.lane.b32.xlu2 %v1036_v42, %s902_s17 }
 0x486   : > { %v345_v43 = vpop.permute.xlu2 %344 }
 0x487   : > { %v367_v44 = vmul.f32 %v345_v43, %v1036_v42  ;;  %v357_v45 = vrot.slane %v345_v43, 7  ;;  %v347_v46 = vrot.slane %v345_v43, 6  ;;  %v375_v52 = vrot.slane %v345_v43, 1 }
 0x488   : > { %v385_v55 = vrot.slane %v345_v43, 2 }
 0x489   : > { %v368_v47 = vsel %vm203_vm0, %v367_v44, 0.0  ;;  %v358_v48 = vmul.f32 %v357_v45, %v1036_v42  ;;  %v348_v49 = vmul.f32 %v347_v46, %v1036_v42  ;;  %v376_v53 = vmul.f32 %v375_v52, %v1036_v42 }
 0x48a   : > { %369 = vadd.xlane.f32.xlu1 %v368_v47  ;;  %v386_v56 = vmul.f32 %v385_v55, %v1036_v42 }
 0x48b   : > { %v359_v50 = vsel %vm203_vm0, %v358_v48, 0.0  ;;  %v349_v51 = vsel %vm203_vm0, %v348_v49, 0.0  ;;  %v377_v54 = vsel %vm203_vm0, %v376_v53, 0.0 }
 0x48c   : > { %360 = vadd.xlane.f32.xlu0 %v359_v50  ;;  %350 = vadd.xlane.f32.xlu2 %v349_v51  ;;  %v387_v57 = vsel %vm203_vm0, %v386_v56, 0.0 }
 0x494   : > { %378 = vadd.xlane.f32.xlu2 %v377_v54 }
 0x49c   : > { %388 = vadd.xlane.f32.xlu2 %v387_v57 }
 0x4b4   : > { %433 = vrot.lane.b32.xlu2 %v1036_v42, %s903_s27 }
 0x4fd   : > { %v370_v7 = vpop.xlane.xlu1 %369 }
 0x4ff   : > { %v351_v63 = vpop.xlane.xlu2 %350  ;;  %v361_v0 = vpop.xlane.xlu0 %360 }
 0x500   : > { %v366_v2 = vsel %vm363_vm7, %v361_v0, -1e+30  ;;  %v356_v3 = vsel %vm353_vm8, %v351_v63, -1e+30 }
 0x501   : > { %v395_v5 = vmax.f32 %v356_v3, %v366_v2 }
 0x503   : > { %v396_v9 = vmax.f32 %v395_v5, %v370_v7 }
 0x507   : > { %v379_v4 = vpop.xlane.xlu2 %378 }
 0x508   : > { %v384_v8 = vsel %vm382_vm9, %v379_v4, -1e+30 }
 0x509   : > { %v397_v10 = vmax.f32 %v396_v9, %v384_v8  ;;  %v904_v9 = vmov 32.0  }
 0x50f   : > { %v389_v11 = vpop.xlane.xlu2 %388 }
 0x510   : > { %v394_v13 = vsel %vm392_vm10, %v389_v11, -1e+30 }
 0x511   : > { %v398_v14 = vmax.f32 %v397_v10, %v394_v13 }
 0x513   : > { %v399_v15 = vsub.f32 %v356_v3, %v398_v14  ;;  %v402_v16 = vsub.f32 %v366_v2, %v398_v14  ;;  %v405_v17 = vsub.f32 %v370_v7, %v398_v14  ;;  %v408_v18 = vsub.f32 %v384_v8, %v398_v14 }
 0x514   : > { %v411_v22 = vsub.f32 %v394_v13, %v398_v14 }
 0x515   : > { %v400_v19 = vmul.f32 1.442695, %v399_v15  ;;  %v403_v20 = vmul.f32 1.442695, %v402_v16  ;;  %v406_v21 = vmul.f32 1.442695, %v405_v17 }
 0x516   : > { %v409_v23 = vmul.f32 1.442695, %v408_v18  ;;  %v412_v24 = vmul.f32 1.442695, %v411_v22 }
 0x517   : > { %749 = vpow2.f32 %v400_v19  ;;  %v434_v43 = vpop.permute.xlu2 %433 }
 0x518   : > { %751 = vpow2.f32 %v403_v20  ;;  %v436_v47 = vrot.slane %v434_v43, 6  ;;  %v439_v52 = vrot.slane %v434_v43, 7  ;;  %v450_v61 = vrot.slane %v434_v43, 1 }
 0x519   : > { %753 = vpow2.f32 %v406_v21  ;;  %v454_v63 = vrot.slane %v434_v43, 2 }
 0x51a   : > { %755 = vpow2.f32 %v409_v23 }
 0x51b   : > { %757 = vpow2.f32 %v412_v24 }
 0x51d   : > { %v750_v26 = vpop.eup %749 }
 0x51e   : > { %v752_v27 = vpop.eup %751 }
 0x51f   : > { %v414_v28 = vadd.f32 %v752_v27, %v750_v26  ;;  %v754_v29 = vpop.eup %753 }
 0x520   : > { %v756_v31 = vpop.eup %755 }
 0x521   : > { %v415_v30 = vadd.f32 %v754_v29, %v414_v28  ;;  %v758_v33 = vpop.eup %757 }
 0x523   : > { %v416_v32 = vadd.f32 %v756_v31, %v415_v30  ;;  %v743_v30 = vld [vmem:[#allocation5 + $0x93] ss:$0 sm:$0xff] }
 0x525   : > { %v417_v34 = vadd.f32 %v758_v33, %v416_v32  ;;  %v744_v32 = vld [vmem:[#allocation5 + $0x94] ss:$0 sm:$0xff] }
 0x527   : > { %759 = vrcp.f32 %v417_v34  ;;  %v429_v38 = vand.u32 2147483648, %v417_v34  ;;  %v427_v40 = vand.u32 2147483647, %v417_v34  ;;  %vm423_vm12 = vweird.f32 %v417_v34 }
 0x528   : > { %761 = vrcp.f32 %v904_v9 }
 0x529   : > { %v430_v44 = vor.u32 1.1754944e-38, %v429_v38  ;;  %vm428_vm14 = vcmp.eq.f32.partialorder %v427_v40, 8.507059e+37 }
 0x52d   : > { %v760_v35 = vpop.eup %759 }
 0x52e   : > { %v419_v36 = vmul.f32 %v760_v35, %v417_v34  ;;  %vm424_vm11 = vweird.f32 %v760_v35  ;;  %v762_v10 = vpop.eup %761 }
 0x52f   : > { %vm425_vm13 = vmor %vm423_vm12, %vm424_vm11  ;;  %v488_v11 = vmul.f32 32.0, %v762_v10  ;;  %vm492_vm15 = vweird.f32 %v762_v10 }
 0x530   : > { %v420_v37 = vsub.f32 1.0, %v419_v36 }
 0x531   : > { %v489_v13 = vsub.f32 1.0, %v488_v11 }
 0x532   : > { %v421_v39 = vmul.f32 %v760_v35, %v420_v37 }
 0x533   : > { %v490_v14 = vmul.f32 %v762_v10, %v489_v13 }
 0x534   : > { %v422_v41 = vadd.f32 %v760_v35, %v421_v39 }
 0x535   : > { %v491_v15 = vadd.f32 %v762_v10, %v490_v14 }
 0x536   : > { %v426_v45 = vsel %vm425_vm13, %v760_v35, %v422_v41 }
 0x537   : > { %v431_v46 = vsel %vm428_vm14, %v430_v44, %v426_v45  ;;  %v493_v16 = vsel %vm492_vm15, %v762_v10, %v491_v15 }
 0x538   : > { %v455_v48 = vmul.f32 %v758_v33, %v431_v46  ;;  %v443_v49 = vmul.f32 %v754_v29, %v431_v46  ;;  %v451_v50 = vmul.f32 %v756_v31, %v431_v46  ;;  %v437_v51 = vmul.f32 %v750_v26, %v431_v46 }
 0x539   : > { %v440_v53 = vmul.f32 %v752_v27, %v431_v46 }
 0x53a   : > { %v444_v54 = vmul.f32 %v443_v49, %v1036_v42  ;;  %v438_v55 = vmul.f32 %v437_v51, %v436_v47  ;;  %v452_v1 = vmul.f32 %v451_v50, %v450_v61  ;;  %v456_v2 = vmul.f32 %v455_v48, %v454_v63  ;;  %v742_v42 = vld [vmem:[#allocation5 + $0x92] ss:$0 sm:$0xff] }
 0x53b   : > { %v441_v56 = vmul.f32 %v440_v53, %v439_v52 }
 0x53c   : > { %446 = vrot.lane.b32.xlu0 %v444_v54, %s903_s27 }
 0x53d   : > { %v442_v57 = vadd.f32 %v441_v56, %v438_v55 }
 0x5ae   : > { %v447_v62 = vpop.permute.xlu0 %446 }
 0x5af   : > { %v449_v0 = vadd.f32 %v447_v62, %v442_v57 }
 0x5b1   : > { %v453_v3 = vadd.f32 %v452_v1, %v449_v0 }
 0x5b3   : > { %v457_v4 = vadd.f32 %v456_v2, %v453_v3 }
 0x5b5   : > { %672 = vmatmul.msk.f32.vlgmr.msrb.gmra.mxu2 %vm203_vm0, %v457_v4 }
 0x638   : > { %v478_v5 = vpop.f32.mrf.mxu2 }
 0x639   : > { %v481_v6 = vadd.f32 %v478_v5, %v1027_v12 }
 0x63b   : > { %v483_v7 = vadd.f32 %v742_v42, %v481_v6 }
 0x63d   : > { %v484_v8 = vsel %vm203_vm0, %v483_v7, 0.0 }
 0x63e   : > { %485 = vadd.xlane.f32.xlu1 %v484_v8 }
 0x6b1   : > { %v486_v17 = vpop.xlane.xlu1 %485 }
 0x6b2   : > { %v494_v18 = vmul.f32 %v493_v16, %v486_v17 }
 0x6b4   : > { %v495_v19 = vsub.f32 %v483_v7, %v494_v18 }
 0x6b6   : > { %v496_v20 = vmul.f32 %v495_v19, %v495_v19 }
 0x6b8   : > { %v497_v21 = vsel %vm203_vm0, %v496_v20, 0.0 }
 0x6b9   : > { %498 = vadd.xlane.f32.xlu1 %v497_v21 }
 0x72c   : > { %v499_v12 = vpop.xlane.xlu1 %498 }
 0x72d   : > { %v500_v22 = vmul.f32 %v499_v12, %v493_v16 }
 0x72f   : > { %v501_v23 = vadd.f32 1e-05, %v500_v22 }
 0x731   : > { %763 = vrsqrt.f32 %v501_v23  ;;  %vm508_vm2 = vweird.f32 %v501_v23 }
 0x737   : > { %v764_v24 = vpop.eup %763 }
 0x738   : > { %v503_v25 = vmul.f32 %v764_v24, %v501_v23  ;;  %vm509_vm1 = vweird.f32 %v764_v24 }
 0x739   : > { %vm510_vm3 = vmor %vm508_vm2, %vm509_vm1 }
 0x73a   : > { %v504_v26 = vmul.f32 %v764_v24, %v503_v25 }
 0x73c   : > { %v505_v27 = vmul.f32 0.5, %v504_v26 }
 0x73e   : > { %v506_v28 = vsub.f32 1.5, %v505_v27 }
 0x740   : > { %v507_v29 = vmul.f32 %v764_v24, %v506_v28 }
 0x742   : > { %v511_v31 = vsel %vm510_vm3, %v764_v24, %v507_v29 }
 0x743   : > { %v512_v33 = vmul.f32 %v511_v31, %v495_v19 }
 0x745   : > { %v514_v34 = vmul.f32 %v743_v30, %v512_v33 }
 0x747   : > { %v516_v35 = vadd.f32 %v744_v32, %v514_v34 }
 0x749   : > { %v518_v36 = vmul.f32 0.70710677, %v516_v35  ;;  %v517_v8 = vmul.f32 0.5, %v516_v35 }
 0x74b   : > { %v519_v37 = vmul.f32 %v518_v36, %v518_v36 }
 0x74d   : > { %v520_v38 = vmin.f32 %v519_v37, 16.0 }
 0x74f   : > { %v521_v39 = vmul.f32 2.1237322e-06, %v520_v38  ;;  %v532_v40 = vmul.f32 3.8918573e-05, %v520_v38 }
 0x751   : > { %v522_v41 = vadd.f32 0.00028619796, %v521_v39  ;;  %v533_v43 = vadd.f32 0.001143296, %v532_v40 }
 0x753   : > { %v523_v44 = vmul.f32 %v522_v41, %v520_v38  ;;  %v534_v45 = vmul.f32 %v533_v43, %v520_v38 }
 0x755   : > { %v535_v46 = vadd.f32 0.014752088, %v534_v45  ;;  %v524_v47 = vadd.f32 0.0036580483, %v523_v44 }
 0x757   : > { %v536_v48 = vmul.f32 %v535_v46, %v520_v38  ;;  %v525_v50 = vmul.f32 %v524_v47, %v520_v38 }
 0x759   : > { %v537_v49 = vadd.f32 0.112945676, %v536_v48  ;;  %v526_v53 = vadd.f32 0.05243302, %v525_v50 }
 0x75b   : > { %v538_v51 = vmul.f32 %v537_v49, %v520_v38  ;;  %v527_v56 = vmul.f32 %v526_v53, %v520_v38 }
 0x75d   : > { %v539_v52 = vadd.f32 0.4994258, %v538_v51  ;;  %v528_v57 = vadd.f32 0.18741608, %v527_v56 }
 0x75f   : > { %v540_v54 = vmul.f32 %v539_v52, %v520_v38  ;;  %v529_v59 = vmul.f32 %v528_v57, %v520_v38 }
 0x761   : > { %v541_v55 = vadd.f32 1.0, %v540_v54  ;;  %v530_v63 = vadd.f32 1.1283791, %v529_v59 }
 0x763   : > { %765 = vrcp.f32 %v541_v55  ;;  %v553_v62 = vand.u32 2147483648, %v541_v55  ;;  %v551_v1 = vand.u32 2147483647, %v541_v55  ;;  %vm547_vm5 = vweird.f32 %v541_v55 }
 0x764   : > { %v531_v4 = vmul.f32 %v530_v63, %v518_v36 }
 0x765   : > { %v554_v3 = vor.u32 1.1754944e-38, %v553_v62  ;;  %vm552_vm7 = vcmp.eq.f32.partialorder %v551_v1, 8.507059e+37 }
 0x769   : > { %v766_v58 = vpop.eup %765 }
 0x76a   : > { %v543_v60 = vmul.f32 %v766_v58, %v541_v55  ;;  %vm548_vm4 = vweird.f32 %v766_v58 }
 0x76b   : > { %vm549_vm6 = vmor %vm547_vm5, %vm548_vm4 }
 0x76c   : > { %v544_v61 = vsub.f32 1.0, %v543_v60 }
 0x76e   : > { %v545_v0 = vmul.f32 %v766_v58, %v544_v61 }
 0x770   : > { %v546_v2 = vadd.f32 %v766_v58, %v545_v0 }
 0x772   : > { %v550_v42 = vsel %vm549_vm6, %v766_v58, %v546_v2 }
 0x773   : > { %v555_v5 = vsel %vm552_vm7, %v554_v3, %v550_v42 }
 0x774   : > { %v556_v6 = vmul.f32 %v555_v5, %v531_v4 }
 0x776   : > { %v673_v7 = vclamps-f32 %v556_v6, 1.0 }
 0x778   : > { %v559_v9 = vadd.f32 1.0, %v673_v7 }
 0x77a   : > { %v560_v10 = vmul.f32 %v559_v9, %v517_v8 }
 0x77c   : > { %561 = vst.msk [vmem:[%s177_s15] sm:$0xff] %vm203_vm0, %v560_v10 }
 0x77d   : > { %854 = shalt.err (!%p851_p9)
}
 0x77e   : > { %684 = dma.vmem_to_hbm [thread:$0]  (%p980_p13), %s576_s18, 128, %s578_s19, %s563_s16  }
 0x77f PF: > { %s589_s29 = sand.u32 1, %s885_s9   ;;  %p1102_p10 = scmp.ge.s32.totalorder %s897_s12, 2 }
 0x780   : > { %s590_s5 = scalar_lea.sflag [#allocation4], %s589_s29 }
 0x781   : > { %p695_p11 = pnand %p1102_p10, %p985_p4 }
 0x783   : > { %p696_p0 = pneg %p695_p11 }
 0x785   : > { %880 = dma.done.wait (%p696_p0), %s590_s5, 128  }
 0x786   : > { %882 = vsyncadd (%p696_p0), %s590_s5, 4294967168  ;;  %p16_p2 = scmp.ge.s32.totalorder %s960_s23, 4   ;;  %s1103_s9 = smov %s889_s10 }
 0x787   : > { %s1104_s10 = smov %s893_s11  ;;  %s1105_s11 = smov %s972_s26 }
 0x788   : > { %s1106_s12 = smov %s960_s23  ;;  %18 = sbr.rel (!%p16_p2) target bundleno = 6 (0x6), region = 77 }
 0x78d   :  { %596 = vsyncpa [#allocation3], 1 }
 0x78e   :  { %598 = vsyncpa [#allocation3 + $0x1], 1 }
 0x78f   :  { %599 = vsyncpa [#allocation6], 1 }
 0x790   :  { %600 = vsyncpa [#allocation4], 1 }
 0x791   :  { %602 = vsyncpa [#allocation4 + $0x1], 1 }

</bundles_post_ra>
